<compile_context>
chip_gen: v7x
topology: tpu7x:2x2x1
jax: 0.10.0
libtpu: 0.0.40
codegen_flags: <defaults>
</compile_context>

<pallas_src>
import functools
import math

import jax
import jax.numpy as jnp
from jax.experimental import pallas as pl
from jax.experimental.pallas import tpu as pltpu

LANES = 128                      # TPU lane width
MATMUL_DTYPE = jnp.bfloat16      # MXU input dtype for hidden-layer dots (f32 accumulation)


# ----------------------------------------------------------------------------
# Fused Pallas kernel (one batch tile per grid step)
# ----------------------------------------------------------------------------
def _fused_actor_critic_kernel(tb, n_pad, n_actor_hidden, n_critic_hidden, *refs):
    """refs layout (all VMEM blocks):
      [0] x_actor  [tb*n_pad, D_a] f32
      [1] mask     [tb, n_pad]     int32  (nonzero => score -> -inf; padded lanes == 1)
      [2] x_critic [tb, D_c]       f32
      next 2*(n_actor_hidden+1)  : actor params  (hidden: W bf16 [in,out], b f32 [1,out];
                                                  final : w_row f32 [1,H], b f32 [1,1])
      next 2*(n_critic_hidden+1) : critic params (same layout)
      [-2] probs out [tb, n_pad] f32   (lane-dense)
      [-1] value out [tb, 1]     f32
    """
    n_a = 2 * (n_actor_hidden + 1)
    n_c = 2 * (n_critic_hidden + 1)
    xa_ref, mask_ref, xc_ref = refs[0], refs[1], refs[2]
    a_refs = refs[3:3 + n_a]
    c_refs = refs[3 + n_a:3 + n_a + n_c]
    probs_ref = refs[3 + n_a + n_c]
    value_ref = refs[3 + n_a + n_c + 1]

    def mlp_hidden(x, p_refs, n_hidden):
        h = x
        for i in range(n_hidden):
            w = p_refs[2 * i][...]                                    # bf16 [in, out]
            b = p_refs[2 * i + 1][...]                                # f32  [1, out]
            acc = jnp.dot(h.astype(MATMUL_DTYPE), w,
                          preferred_element_type=jnp.float32)         # f32 accumulation
            h = jnp.tanh(acc + b)                                      # f32 EUP tanh
        return h

    # ---------------- actor MLP (rows = tb * n_pad, hidden layers on the MXU) ----
    h = mlp_hidden(xa_ref[...], a_refs, n_actor_hidden)
    w_row = a_refs[2 * n_actor_hidden][...]                            # f32 [1, H]
    b_last = a_refs[2 * n_actor_hidden + 1][...]                       # f32 [1, 1]
    # Final out_dim==1 layer as VPU multiply + lane reduce.  The reshape only splits
    # the leading (sublane) dim; with n_pad a multiple of 128 the reduce's relayout
    # onto the lane axis is tile-aligned.
    h3 = h.reshape(tb, n_pad, h.shape[-1])
    scores = jnp.sum(h3 * w_row, axis=-1) + b_last                     # f32 [tb, n_pad]

    # ---------------- masked softmax over the (padded, lane-dense) candidate axis -
    s = jnp.where(mask_ref[...] != 0, -jnp.inf, scores)
    m = jnp.max(s, axis=-1, keepdims=True)
    e = jnp.exp(s - m)                                                 # padded lanes -> 0
    den = jnp.sum(e, axis=-1, keepdims=True)
    probs_ref[...] = (e * pl.reciprocal(den, approx=True)).astype(probs_ref.dtype)

    # ---------------- critic MLP (rows = tb, same batch-tile grid) ----------------
    g = mlp_hidden(xc_ref[...], c_refs, n_critic_hidden)
    wc_row = c_refs[2 * n_critic_hidden][...]                          # f32 [1, H]
    bc = c_refs[2 * n_critic_hidden + 1][...]                          # f32 [1, 1]
    value = jnp.sum(g * wc_row, axis=-1, keepdims=True) + bc           # f32 [tb, 1]
    value_ref[...] = value.astype(value_ref.dtype)


# ----------------------------------------------------------------------------
# Wrapper
# ----------------------------------------------------------------------------
@jax.jit
def actor_critic_forward(actor_params, critic_params, input_actor, input_critic, mask):
    """Replicates ActorCritic.forward:
         scores = actor(input_actor); scores[mask] = -inf
         action_probs = softmax(scores, dim=-2)
         state_value  = critic(input_critic)
    """
    B, N, D_a = input_actor.shape
    D_c = input_critic.shape[-1]
    n_ah = len(actor_params) - 1
    n_ch = len(critic_params) - 1

    # Pad candidate axis to a multiple of 128 lanes -> lane-dense probs output and
    # aligned softmax reductions.  Padded inputs are zeros; padded mask lanes True.
    n_pad = max(LANES, ((N + LANES - 1) // LANES) * LANES)
    pad_n = n_pad - N
    xa2 = jnp.pad(input_actor, ((0, 0), (0, pad_n), (0, 0))).reshape(B * n_pad, D_a)
    mask2 = jnp.pad(jnp.reshape(mask, (B, N)), ((0, 0), (0, pad_n)),
                    constant_values=True).astype(jnp.int32)

    # Batch tile: multiple of 8 sublanes when possible, full batch otherwise.
    # tb=8 -> ~8*128 actor rows per tile; weights + double-buffered tiles stay well
    # under v7x's 64 MiB VMEM at these dims.
    tb = min(B, 8) if B % 8 == 0 else B
    grid = (B // tb,)

    in_specs = [
        pl.BlockSpec((tb * n_pad, D_a), lambda i: (i, 0)),   # actor input tile
        pl.BlockSpec((tb, n_pad), lambda i: (i, 0)),         # mask tile
        pl.BlockSpec((tb, D_c), lambda i: (i, 0)),           # critic input tile
    ]
    flat_params = []

    def add_mlp(params):
        n_hidden = len(params) - 1
        for li, (w, b) in enumerate(params):
            if li < n_hidden:
                w = w.astype(MATMUL_DTYPE)                   # bf16 MXU inputs
            flat_params.extend([w, b])
            # Full-array blocks, constant index -> weights stay VMEM-resident
            in_specs.append(pl.BlockSpec(w.shape, lambda i: (0, 0)))
            in_specs.append(pl.BlockSpec(b.shape, lambda i: (0, 0)))

    add_mlp(actor_params)
    add_mlp(critic_params)

    kernel = functools.partial(_fused_actor_critic_kernel, tb, n_pad, n_ah, n_ch)
    probs_pad, state_value = pl.pallas_call(
        kernel,
        out_shape=(
            jax.ShapeDtypeStruct((B, n_pad), jnp.float32),
            jax.ShapeDtypeStruct((B, 1), jnp.float32),
        ),
        grid_spec=pltpu.PrefetchScalarGridSpec(
            num_scalar_prefetch=0,
            grid=grid,
            in_specs=in_specs,
            out_specs=(
                pl.BlockSpec((tb, n_pad), lambda i: (i, 0)),
                pl.BlockSpec((tb, 1), lambda i: (i, 0)),
            ),
        ),
        compiler_params=pltpu.CompilerParams(dimension_semantics=("parallel",)),
    )(xa2, mask2, input_critic, *flat_params)

    # Slice off softmax padding; trailing singleton matches the PyTorch [B, N, 1] probs.
    return probs_pad[:, :N].reshape(B, N, 1), state_value


# ----------------------------------------------------------------------------
# Deterministic parameter init (PyTorch-Linear-like uniform(-1/sqrt(fan_in), ...))
# ----------------------------------------------------------------------------
def init_mlp(key, input_dim, hidden_dim, output_dim, hidden_layers):
    """Hidden layers stored as (W [in, out], b [1, out]); final layer (output_dim
    must be 1, as in ActorCritic) stored as (w_row [1, in], b [1, 1])."""
    assert output_dim == 1
    if hidden_layers > 0:
        dims = ([(input_dim, hidden_dim)]
                + [(hidden_dim, hidden_dim)] * (hidden_layers - 1)
                + [(hidden_dim, output_dim)])
    else:
        dims = [(input_dim, output_dim)]
    keys = jax.random.split(key, len(dims))
    params = []
    for li, (k, (fi, fo)) in enumerate(zip(keys, dims)):
        k_w, k_b = jax.random.split(k)
        bound = 1.0 / math.sqrt(fi)
        b = jax.random.uniform(k_b, (1, fo), jnp.float32, -bound, bound)
        if li == len(dims) - 1:
            w = jax.random.uniform(k_w, (1, fi), jnp.float32, -bound, bound)
        else:
            w = jax.random.uniform(k_w, (fi, fo), jnp.float32, -bound, bound)
        params.append((w, b))
    return params


# ----------------------------------------------------------------------------
# Pure-JAX reference (full f32 / HIGHEST precision) for a sanity check
# ----------------------------------------------------------------------------
def _reference_forward(actor_params, critic_params, input_actor, input_critic, mask):
    hi = jax.lax.Precision.HIGHEST

    def mlp(x, params):
        for i, (w, b) in enumerate(params):
            if i == len(params) - 1:                       # final layer: w is [1, in]
                x = jnp.dot(x, w.T, precision=hi) + b
            else:
                x = jnp.tanh(jnp.dot(x, w, precision=hi) + b)
        return x

    B, N, D_a = input_actor.shape
    scores = mlp(input_actor.reshape(B * N, D_a), actor_params).reshape(B, N, 1)
    scores = jnp.where(mask, -jnp.inf, scores)
    probs = jax.nn.softmax(scores, axis=-2)
    value = mlp(input_critic, critic_params)
    return probs, value


# ----------------------------------------------------------------------------
if __name__ == "__main__":
    key = jax.random.PRNGKey(0)
    B, N = 2, 8                       # batch, number of candidate actions
    D_a, H_a, L_a = 16, 32, 2         # actor:  input_dim, hidden_dim, hidden_layers
    D_c, H_c, L_c = 16, 32, 2         # critic: input_dim, hidden_dim, hidden_layers

    k_ap, k_cp, k_xa, k_xc, k_m = jax.random.split(key, 5)
    actor_params = init_mlp(k_ap, D_a, H_a, 1, L_a)
    critic_params = init_mlp(k_cp, D_c, H_c, 1, L_c)

    input_actor = jax.random.normal(k_xa, (B, N, D_a), jnp.float32)
    input_critic = jax.random.normal(k_xc, (B, D_c), jnp.float32)
    mask = jax.random.bernoulli(k_m, 0.3, (B, N, 1))   # True => score masked to -inf

    action_probs, state_value = actor_critic_forward(
        actor_params, critic_params, input_actor, input_critic, mask
    )
    jax.block_until_ready((action_probs, state_value))

    assert action_probs.shape == (B, N, 1)
    assert state_value.shape == (B, 1)

    # Sanity check vs pure-JAX f32/HIGHEST reference.  Tolerance accounts for bf16
    # MXU inputs in the kernel's hidden-layer dots + the approx EUP reciprocal.
    ref_probs, ref_value = _reference_forward(
        actor_params, critic_params, input_actor, input_critic, mask
    )
    assert jnp.allclose(action_probs, ref_probs, rtol=3e-2, atol=3e-2, equal_nan=True)
    assert jnp.allclose(state_value, ref_value, rtol=3e-2, atol=3e-2)

    print("KERNEL_OK")
</pallas_src>

<mosaic_0001>
module attributes {stable_mosaic.version = 11 : i64} {
  func.func @_fused_actor_critic_kernel(%arg0: i32, %arg1: memref<256x16xf32, #tpu.memory_space<vmem>>, %arg2: memref<2x128xi32, #tpu.memory_space<vmem>>, %arg3: memref<2x16xf32, #tpu.memory_space<vmem>>, %arg4: memref<16x32xbf16, #tpu.memory_space<vmem>>, %arg5: memref<1x32xf32, #tpu.memory_space<vmem>>, %arg6: memref<32x32xbf16, #tpu.memory_space<vmem>>, %arg7: memref<1x32xf32, #tpu.memory_space<vmem>>, %arg8: memref<1x32xf32, #tpu.memory_space<vmem>>, %arg9: memref<1x1xf32, #tpu.memory_space<vmem>>, %arg10: memref<16x32xbf16, #tpu.memory_space<vmem>>, %arg11: memref<1x32xf32, #tpu.memory_space<vmem>>, %arg12: memref<32x32xbf16, #tpu.memory_space<vmem>>, %arg13: memref<1x32xf32, #tpu.memory_space<vmem>>, %arg14: memref<1x32xf32, #tpu.memory_space<vmem>>, %arg15: memref<1x1xf32, #tpu.memory_space<vmem>>, %arg16: memref<2x128xf32, #tpu.memory_space<vmem>>, %arg17: memref<2x1xf32, #tpu.memory_space<vmem>>) attributes {dimension_semantics = [#tpu.dimension_semantics<parallel>], iteration_bounds = array<i64: 1>, scalar_prefetch = 0 : i64, scratch_operands = 0 : i64, tpu.core_type = #tpu.core_type<tc>, window_params = [{transform_indices = @transform_0, window_bounds = array<i64: 256, 16>}, {transform_indices = @transform_1, window_bounds = array<i64: 2, 128>}, {transform_indices = @transform_2, window_bounds = array<i64: 2, 16>}, {pipeline_mode = #tpu.pipeline_mode<synchronous>, transform_indices = @transform_3, window_bounds = array<i64: 16, 32>}, {pipeline_mode = #tpu.pipeline_mode<synchronous>, transform_indices = @transform_4, window_bounds = array<i64: 1, 32>}, {pipeline_mode = #tpu.pipeline_mode<synchronous>, transform_indices = @transform_5, window_bounds = array<i64: 32, 32>}, {pipeline_mode = #tpu.pipeline_mode<synchronous>, transform_indices = @transform_6, window_bounds = array<i64: 1, 32>}, {pipeline_mode = #tpu.pipeline_mode<synchronous>, transform_indices = @transform_7, window_bounds = array<i64: 1, 32>}, {pipeline_mode = #tpu.pipeline_mode<synchronous>, transform_indices = @transform_8, window_bounds = array<i64: 1, 1>}, {pipeline_mode = #tpu.pipeline_mode<synchronous>, transform_indices = @transform_9, window_bounds = array<i64: 16, 32>}, {pipeline_mode = #tpu.pipeline_mode<synchronous>, transform_indices = @transform_10, window_bounds = array<i64: 1, 32>}, {pipeline_mode = #tpu.pipeline_mode<synchronous>, transform_indices = @transform_11, window_bounds = array<i64: 32, 32>}, {pipeline_mode = #tpu.pipeline_mode<synchronous>, transform_indices = @transform_12, window_bounds = array<i64: 1, 32>}, {pipeline_mode = #tpu.pipeline_mode<synchronous>, transform_indices = @transform_13, window_bounds = array<i64: 1, 32>}, {pipeline_mode = #tpu.pipeline_mode<synchronous>, transform_indices = @transform_14, window_bounds = array<i64: 1, 1>}, {transform_indices = @transform_15, window_bounds = array<i64: 2, 128>}, {transform_indices = @transform_16, window_bounds = array<i64: 2, 1>}]} {
    %c0 = arith.constant 0 : index
    %c0_0 = arith.constant 0 : index
    %0 = vector.load %arg1[%c0, %c0_0] : memref<256x16xf32, #tpu.memory_space<vmem>>, vector<256x16xf32>
    %c0_1 = arith.constant 0 : index
    %c0_2 = arith.constant 0 : index
    %1 = vector.load %arg4[%c0_1, %c0_2] : memref<16x32xbf16, #tpu.memory_space<vmem>>, vector<16x32xbf16>
    %c0_3 = arith.constant 0 : index
    %c0_4 = arith.constant 0 : index
    %2 = vector.load %arg5[%c0_3, %c0_4] : memref<1x32xf32, #tpu.memory_space<vmem>>, vector<1x32xf32>
    %3 = arith.truncf %0 : vector<256x16xf32> to vector<256x16xbf16>
    %cst = arith.constant dense<0.000000e+00> : vector<256x32xf32>
    %4 = tpu.matmul %3, %1, %cst {dimension_numbers = #tpu.dot_dimension_numbers<[1], [0], [0], [1], [0, 0, 1, 1], [], []>} : vector<256x16xbf16>, vector<16x32xbf16>, vector<256x32xf32> -> vector<256x32xf32>
    %5 = vector.broadcast %2 : vector<1x32xf32> to vector<256x32xf32>
    %6 = arith.addf %4, %5 : vector<256x32xf32>
    %7 = math.tanh %6 : vector<256x32xf32>
    %c0_5 = arith.constant 0 : index
    %c0_6 = arith.constant 0 : index
    %8 = vector.load %arg6[%c0_5, %c0_6] : memref<32x32xbf16, #tpu.memory_space<vmem>>, vector<32x32xbf16>
    %c0_7 = arith.constant 0 : index
    %c0_8 = arith.constant 0 : index
    %9 = vector.load %arg7[%c0_7, %c0_8] : memref<1x32xf32, #tpu.memory_space<vmem>>, vector<1x32xf32>
    %10 = arith.truncf %7 : vector<256x32xf32> to vector<256x32xbf16>
    %cst_9 = arith.constant dense<0.000000e+00> : vector<256x32xf32>
    %11 = tpu.matmul %10, %8, %cst_9 {dimension_numbers = #tpu.dot_dimension_numbers<[1], [0], [0], [1], [0, 0, 1, 1], [], []>} : vector<256x32xbf16>, vector<32x32xbf16>, vector<256x32xf32> -> vector<256x32xf32>
    %12 = vector.broadcast %9 : vector<1x32xf32> to vector<256x32xf32>
    %13 = arith.addf %11, %12 : vector<256x32xf32>
    %14 = math.tanh %13 : vector<256x32xf32>
    %c0_10 = arith.constant 0 : index
    %c0_11 = arith.constant 0 : index
    %15 = vector.load %arg8[%c0_10, %c0_11] : memref<1x32xf32, #tpu.memory_space<vmem>>, vector<1x32xf32>
    %c0_12 = arith.constant 0 : index
    %c0_13 = arith.constant 0 : index
    %16 = vector.load %arg9[%c0_12, %c0_13] : memref<1x1xf32, #tpu.memory_space<vmem>>, vector<1x1xf32>
    %17 = vector.shape_cast %14 : vector<256x32xf32> to vector<2x128x32xf32>
    %18 = vector.shape_cast %15 : vector<1x32xf32> to vector<1x1x32xf32>
    %19 = vector.broadcast %18 : vector<1x1x32xf32> to vector<2x128x32xf32>
    %20 = arith.mulf %17, %19 : vector<2x128x32xf32>
    %cst_14 = arith.constant dense<0.000000e+00> : vector<2x128xf32>
    %21 = vector.multi_reduction <add>, %20, %cst_14 [2] : vector<2x128x32xf32> to vector<2x128xf32>
    %22 = vector.broadcast %16 : vector<1x1xf32> to vector<2x128xf32>
    %23 = arith.addf %21, %22 : vector<2x128xf32>
    %c0_15 = arith.constant 0 : index
    %c0_16 = arith.constant 0 : index
    %24 = vector.load %arg2[%c0_15, %c0_16] : memref<2x128xi32, #tpu.memory_space<vmem>>, vector<2x128xi32>
    %c0_i32 = arith.constant 0 : i32
    %25 = vector.broadcast %c0_i32 : i32 to vector<2x128xi32>
    %26 = arith.cmpi ne, %24, %25 : vector<2x128xi32>
    %cst_17 = arith.constant 0xFF800000 : f32
    %27 = vector.broadcast %cst_17 : f32 to vector<2x128xf32>
    %28 = arith.select %26, %27, %23 : vector<2x128xi1>, vector<2x128xf32>
    %cst_18 = arith.constant dense<0xFF800000> : vector<2xf32>
    %29 = vector.multi_reduction <maximumf>, %28, %cst_18 [1] : vector<2x128xf32> to vector<2xf32>
    %30 = vector.shape_cast %29 : vector<2xf32> to vector<2x1xf32>
    %31 = vector.broadcast %30 : vector<2x1xf32> to vector<2x128xf32>
    %32 = arith.subf %28, %31 : vector<2x128xf32>
    %33 = math.exp %32 : vector<2x128xf32>
    %cst_19 = arith.constant dense<0.000000e+00> : vector<2xf32>
    %34 = vector.multi_reduction <add>, %33, %cst_19 [1] : vector<2x128xf32> to vector<2xf32>
    %35 = vector.shape_cast %34 : vector<2xf32> to vector<2x1xf32>
    %36 = tpu.reciprocal %35 {approx = true} : vector<2x1xf32> -> vector<2x1xf32>
    %37 = vector.broadcast %36 : vector<2x1xf32> to vector<2x128xf32>
    %38 = arith.mulf %33, %37 : vector<2x128xf32>
    %c0_20 = arith.constant 0 : index
    %c0_21 = arith.constant 0 : index
    %39 = vector.load %arg16[%c0_20, %c0_21] : memref<2x128xf32, #tpu.memory_space<vmem>>, vector<2x128xf32>
    tpu.vector_store %arg16[%c0_20, %c0_21], %38 {strides = array<i32>} : memref<2x128xf32, #tpu.memory_space<vmem>>, vector<2x128xf32>,
    %c0_22 = arith.constant 0 : index
    %c0_23 = arith.constant 0 : index
    %40 = vector.load %arg3[%c0_22, %c0_23] : memref<2x16xf32, #tpu.memory_space<vmem>>, vector<2x16xf32>
    %c0_24 = arith.constant 0 : index
    %c0_25 = arith.constant 0 : index
    %41 = vector.load %arg10[%c0_24, %c0_25] : memref<16x32xbf16, #tpu.memory_space<vmem>>, vector<16x32xbf16>
    %c0_26 = arith.constant 0 : index
    %c0_27 = arith.constant 0 : index
    %42 = vector.load %arg11[%c0_26, %c0_27] : memref<1x32xf32, #tpu.memory_space<vmem>>, vector<1x32xf32>
    %43 = arith.truncf %40 : vector<2x16xf32> to vector<2x16xbf16>
    %cst_28 = arith.constant dense<0.000000e+00> : vector<2x32xf32>
    %44 = tpu.matmul %43, %41, %cst_28 {dimension_numbers = #tpu.dot_dimension_numbers<[1], [0], [0], [1], [0, 0, 1, 1], [], []>} : vector<2x16xbf16>, vector<16x32xbf16>, vector<2x32xf32> -> vector<2x32xf32>
    %45 = vector.broadcast %42 : vector<1x32xf32> to vector<2x32xf32>
    %46 = arith.addf %44, %45 : vector<2x32xf32>
    %47 = math.tanh %46 : vector<2x32xf32>
    %c0_29 = arith.constant 0 : index
    %c0_30 = arith.constant 0 : index
    %48 = vector.load %arg12[%c0_29, %c0_30] : memref<32x32xbf16, #tpu.memory_space<vmem>>, vector<32x32xbf16>
    %c0_31 = arith.constant 0 : index
    %c0_32 = arith.constant 0 : index
    %49 = vector.load %arg13[%c0_31, %c0_32] : memref<1x32xf32, #tpu.memory_space<vmem>>, vector<1x32xf32>
    %50 = arith.truncf %47 : vector<2x32xf32> to vector<2x32xbf16>
    %cst_33 = arith.constant dense<0.000000e+00> : vector<2x32xf32>
    %51 = tpu.matmul %50, %48, %cst_33 {dimension_numbers = #tpu.dot_dimension_numbers<[1], [0], [0], [1], [0, 0, 1, 1], [], []>} : vector<2x32xbf16>, vector<32x32xbf16>, vector<2x32xf32> -> vector<2x32xf32>
    %52 = vector.broadcast %49 : vector<1x32xf32> to vector<2x32xf32>
    %53 = arith.addf %51, %52 : vector<2x32xf32>
    %54 = math.tanh %53 : vector<2x32xf32>
    %c0_34 = arith.constant 0 : index
    %c0_35 = arith.constant 0 : index
    %55 = vector.load %arg14[%c0_34, %c0_35] : memref<1x32xf32, #tpu.memory_space<vmem>>, vector<1x32xf32>
    %c0_36 = arith.constant 0 : index
    %c0_37 = arith.constant 0 : index
    %56 = vector.load %arg15[%c0_36, %c0_37] : memref<1x1xf32, #tpu.memory_space<vmem>>, vector<1x1xf32>
    %57 = vector.broadcast %55 : vector<1x32xf32> to vector<2x32xf32>
    %58 = arith.mulf %54, %57 : vector<2x32xf32>
    %cst_38 = arith.constant dense<0.000000e+00> : vector<2xf32>
    %59 = vector.multi_reduction <add>, %58, %cst_38 [1] : vector<2x32xf32> to vector<2xf32>
    %60 = vector.shape_cast %59 : vector<2xf32> to vector<2x1xf32>
    %61 = vector.broadcast %56 : vector<1x1xf32> to vector<2x1xf32>
    %62 = arith.addf %60, %61 : vector<2x1xf32>
    %c0_39 = arith.constant 0 : index
    %c0_40 = arith.constant 0 : index
    %63 = vector.load %arg17[%c0_39, %c0_40] : memref<2x1xf32, #tpu.memory_space<vmem>>, vector<2x1xf32>
    tpu.vector_store %arg17[%c0_39, %c0_40], %62 {strides = array<i32>} : memref<2x1xf32, #tpu.memory_space<vmem>>, vector<2x1xf32>,
    return
  }
  func.func @transform_0(%arg0: i32) -> (i32, i32) {
    %c0_i32 = arith.constant 0 : i32
    %c0_i32_0 = arith.constant 0 : i32
    return %arg0, %c0_i32 : i32, i32
  }
  func.func @transform_1(%arg0: i32) -> (i32, i32) {
    %c0_i32 = arith.constant 0 : i32
    %c0_i32_0 = arith.constant 0 : i32
    return %arg0, %c0_i32 : i32, i32
  }
  func.func @transform_2(%arg0: i32) -> (i32, i32) {
    %c0_i32 = arith.constant 0 : i32
    %c0_i32_0 = arith.constant 0 : i32
    return %arg0, %c0_i32 : i32, i32
  }
  func.func @transform_3(%arg0: i32) -> (i32, i32) {
    %c0_i32 = arith.constant 0 : i32
    %c0_i32_0 = arith.constant 0 : i32
    %c0_i32_1 = arith.constant 0 : i32
    return %c0_i32, %c0_i32_0 : i32, i32
  }
  func.func @transform_4(%arg0: i32) -> (i32, i32) {
    %c0_i32 = arith.constant 0 : i32
    %c0_i32_0 = arith.constant 0 : i32
    %c0_i32_1 = arith.constant 0 : i32
    return %c0_i32, %c0_i32_0 : i32, i32
  }
  func.func @transform_5(%arg0: i32) -> (i32, i32) {
    %c0_i32 = arith.constant 0 : i32
    %c0_i32_0 = arith.constant 0 : i32
    %c0_i32_1 = arith.constant 0 : i32
    return %c0_i32, %c0_i32_0 : i32, i32
  }
  func.func @transform_6(%arg0: i32) -> (i32, i32) {
    %c0_i32 = arith.constant 0 : i32
    %c0_i32_0 = arith.constant 0 : i32
    %c0_i32_1 = arith.constant 0 : i32
    return %c0_i32, %c0_i32_0 : i32, i32
  }
  func.func @transform_7(%arg0: i32) -> (i32, i32) {
    %c0_i32 = arith.constant 0 : i32
    %c0_i32_0 = arith.constant 0 : i32
    %c0_i32_1 = arith.constant 0 : i32
    return %c0_i32, %c0_i32_0 : i32, i32
  }
  func.func @transform_8(%arg0: i32) -> (i32, i32) {
    %c0_i32 = arith.constant 0 : i32
    %c0_i32_0 = arith.constant 0 : i32
    %c0_i32_1 = arith.constant 0 : i32
    return %c0_i32, %c0_i32_0 : i32, i32
  }
  func.func @transform_9(%arg0: i32) -> (i32, i32) {
    %c0_i32 = arith.constant 0 : i32
    %c0_i32_0 = arith.constant 0 : i32
    %c0_i32_1 = arith.constant 0 : i32
    return %c0_i32, %c0_i32_0 : i32, i32
  }
  func.func @transform_10(%arg0: i32) -> (i32, i32) {
    %c0_i32 = arith.constant 0 : i32
    %c0_i32_0 = arith.constant 0 : i32
    %c0_i32_1 = arith.constant 0 : i32
    return %c0_i32, %c0_i32_0 : i32, i32
  }
  func.func @transform_11(%arg0: i32) -> (i32, i32) {
    %c0_i32 = arith.constant 0 : i32
    %c0_i32_0 = arith.constant 0 : i32
    %c0_i32_1 = arith.constant 0 : i32
    return %c0_i32, %c0_i32_0 : i32, i32
  }
  func.func @transform_12(%arg0: i32) -> (i32, i32) {
    %c0_i32 = arith.constant 0 : i32
    %c0_i32_0 = arith.constant 0 : i32
    %c0_i32_1 = arith.constant 0 : i32
    return %c0_i32, %c0_i32_0 : i32, i32
  }
  func.func @transform_13(%arg0: i32) -> (i32, i32) {
    %c0_i32 = arith.constant 0 : i32
    %c0_i32_0 = arith.constant 0 : i32
    %c0_i32_1 = arith.constant 0 : i32
    return %c0_i32, %c0_i32_0 : i32, i32
  }
  func.func @transform_14(%arg0: i32) -> (i32, i32) {
    %c0_i32 = arith.constant 0 : i32
    %c0_i32_0 = arith.constant 0 : i32
    %c0_i32_1 = arith.constant 0 : i32
    return %c0_i32, %c0_i32_0 : i32, i32
  }
  func.func @transform_15(%arg0: i32) -> (i32, i32) {
    %c0_i32 = arith.constant 0 : i32
    %c0_i32_0 = arith.constant 0 : i32
    return %arg0, %c0_i32 : i32, i32
  }
  func.func @transform_16(%arg0: i32) -> (i32, i32) {
    %c0_i32 = arith.constant 0 : i32
    %c0_i32_0 = arith.constant 0 : i32
    return %arg0, %c0_i32 : i32, i32
  }
}

</mosaic_0001>

<bundles_post_ra>
// kernel: actor_critic_forward.1
= control target key start
LH: loop header
LB: loop body
LE: loop exit
PB: predicated region body
PF: predicated region fallthrough
CT: control target
= control target key end

     0   :  { %s2184_s0 = inlined_call_operand.vmem [shape: f32[256,16], index: 0, kind: input, shape index: {}]   ;;  %s2185_s1 = inlined_call_operand.vmem [shape: s32[2,128], index: 1, kind: input, shape index: {}]   ;;  %s2186_s2 = inlined_call_operand.vmem [shape: f32[2,16], index: 2, kind: input, shape index: {}]   ;;  %s2187_s3 = inlined_call_operand.vmem [shape: bf16[16,32], index: 3, kind: input, shape index: {}]   ;;  %s2188_s4 = inlined_call_operand.vmem [shape: f32[1,32], index: 4, kind: input, shape index: {}]   ;;  %s2189_s5 = inlined_call_operand.vmem [shape: bf16[32,32], index: 5, kind: input, shape index: {}]   ;;  %s2190_s6 = inlined_call_operand.vmem [shape: f32[1,32], index: 6, kind: input, shape index: {}]   ;;  %s2191_s7 = inlined_call_operand.vmem [shape: f32[1,32], index: 7, kind: input, shape index: {}]   ;;  %s2192_s8 = inlined_call_operand.<no memory space> [shape: f32[1,1], index: 8, kind: input, shape index: {}]   ;;  %s2193_s9 = inlined_call_operand.vmem [shape: bf16[16,32], index: 9, kind: input, shape index: {}]   ;;  %s2194_s10 = inlined_call_operand.vmem [shape: f32[1,32], index: 10, kind: input, shape index: {}]   ;;  %s2195_s11 = inlined_call_operand.vmem [shape: bf16[32,32], index: 11, kind: input, shape index: {}]   ;;  %s2196_s12 = inlined_call_operand.vmem [shape: f32[1,32], index: 12, kind: input, shape index: {}]   ;;  %s2197_s13 = inlined_call_operand.vmem [shape: f32[1,32], index: 13, kind: input, shape index: {}]   ;;  %s2198_s15 = inlined_call_operand.hbm [shape: f32[2,128], index: 15, kind: output, shape index: {0}]   ;;  %s2199_s16 = inlined_call_operand.vmem [shape: f32[2,1], index: 16, kind: output, shape index: {1}]   ;;  %s2200_s14 = inlined_call_operand.<no memory space> [shape: f32[1,1], index: 14, kind: input, shape index: {}]  }
   0x1   :  { %2202 = sst [smem:[#allocation7_spill]] %s2184_s0  ;;  %v22_v0 = vstv %s2192_s8  ;;  %v24_v1 = vstv %s2200_s14 }
   0x2   :  { %23 = vst [vmem:[#allocation2] sm:$0x1] %v22_v0  ;;  %25 = vst [vmem:[#allocation3] sm:$0x1] %v24_v1 }
   0x3   :  { %v1408_v2 = vld [vmem:[%s2187_s3] sm:$0xff]   ;;  %s2203_s29 = sld [smem:[#allocation7_spill]]  ;;  %vm121_vm0 = vcmask 130048  }
   0x4   :  { %1319 = vmatprep.subr.bf16.mxu0 %v1408_v2 }
   0x5   :  { %1320 = vmatpush3.bf16.msra.mxu0 %v1408_v2 }
   0x9   :  { %v58_v3 = vld [vmem:[%s2203_s29] sm:$0xff]  ;;  %v59_v4 = vld [vmem:[%s2203_s29 + $0x8] sm:$0xff]  ;;  %v60_v5 = vld [vmem:[%s2203_s29 + $0x10] sm:$0xff] }
   0xa   :  { %v93_v6 = vpack.c.bf16 %v59_v4, %v58_v3  ;;  %v61_v7 = vld [vmem:[%s2203_s29 + $0x18] sm:$0xff]  ;;  %v62_v8 = vld [vmem:[%s2203_s29 + $0x20] sm:$0xff]  ;;  %v63_v9 = vld [vmem:[%s2203_s29 + $0x28] sm:$0xff] }
   0xb   :  { %v94_v10 = vpack.c.bf16 %v61_v7, %v60_v5  ;;  %v95_v11 = vpack.c.bf16 %v63_v9, %v62_v8  ;;  %v64_v12 = vld [vmem:[%s2203_s29 + $0x30] sm:$0xff]  ;;  %v65_v13 = vld [vmem:[%s2203_s29 + $0x38] sm:$0xff]  ;;  %v66_v14 = vld [vmem:[%s2203_s29 + $0x40] sm:$0xff] }
   0xc   :  { %1321 = vmatprep.mubr.msk.bf16.mxu0 %vm121_vm0, %v93_v6  ;;  %v67_v15 = vld [vmem:[%s2203_s29 + $0x48] sm:$0xff]  ;;  %v96_v16 = vpack.c.bf16 %v65_v13, %v64_v12  ;;  %v68_v18 = vld [vmem:[%s2203_s29 + $0x50] sm:$0xff]  ;;  %v69_v19 = vld [vmem:[%s2203_s29 + $0x58] sm:$0xff] }
   0xd   :  { %1322 = vmatmul.mubr.msk.bf16.vlgmr.msra.gmra.mrb[0].mxu0 %vm121_vm0, %v94_v10  ;;  %v97_v17 = vpack.c.bf16 %v67_v15, %v66_v14 }
   0xe   :  { %1325 = vmatprep.mubr.msk.bf16.mxu0 %vm121_vm0, %v95_v11 }
  0x15   :  { %1326 = vmatmul.mubr.msk.bf16.gmra.mrb[4].mxu0 %vm121_vm0, %v96_v16 }
  0x16   :  { %1329 = vmatprep.mubr.msk.bf16.mxu0 %vm121_vm0, %v97_v17 }
  0x17   :  { %26 = vsyncpa [#allocation5], 0  ;;  %v70_v20 = vld [vmem:[%s2203_s29 + $0x60] sm:$0xff]  ;;  %v71_v21 = vld [vmem:[%s2203_s29 + $0x68] sm:$0xff]  ;;  %v98_v22 = vpack.c.bf16 %v69_v19, %v68_v18  ;;  %v1574_v55 = vmov 0.0   ;;  %vm1575_vm1 = vmmov 0  }
  0x18   :  { %v99_v23 = vpack.c.bf16 %v71_v21, %v70_v20  ;;  %v72_v24 = vld [vmem:[%s2203_s29 + $0x70] sm:$0xff]  ;;  %v73_v25 = vld [vmem:[%s2203_s29 + $0x78] sm:$0xff]  ;;  %v74_v26 = vld [vmem:[%s2203_s29 + $0x80] sm:$0xff]  ;;  %1389 = vmatprep.subr.bf16.mxu0 %v1574_v55  ;;  %vm402_vm2 = vcmask 261120   ;;  %vm866_vm3 = vcmask 130112   ;;  %vm873_vm4 = vcmask 195712  }
  0x19   :  { %v75_v27 = vld [vmem:[%s2203_s29 + $0x88] sm:$0xff]  ;;  %v100_v28 = vpack.c.bf16 %v73_v25, %v72_v24  ;;  %v76_v30 = vld [vmem:[%s2203_s29 + $0x90] sm:$0xff]  ;;  %v77_v31 = vld [vmem:[%s2203_s29 + $0x98] sm:$0xff]  ;;  %vm880_vm5 = vcmask 261312   ;;  %vm887_vm6 = vcmask 326912   ;;  %vm894_vm7 = vcmask 392512  }
  0x1a   :  { %v101_v29 = vpack.c.bf16 %v75_v27, %v74_v26  ;;  %v78_v32 = vld [vmem:[%s2203_s29 + $0xa0] sm:$0xff]  ;;  %v79_v33 = vld [vmem:[%s2203_s29 + $0xa8] sm:$0xff]  ;;  %v102_v34 = vpack.c.bf16 %v77_v31, %v76_v30  ;;  %v80_v36 = vld [vmem:[%s2203_s29 + $0xb0] sm:$0xff]  ;;  %vm901_vm8 = vcmask 458112   ;;  %vm908_vm9 = vcmask 523712   ;;  %s1577_s23 = smov [#allocation4]  }
  0x1b   :  { %v103_v35 = vpack.c.bf16 %v79_v33, %v78_v32  ;;  %v81_v37 = vld [vmem:[%s2203_s29 + $0xb8] sm:$0xff]  ;;  %v82_v38 = vld [vmem:[%s2203_s29 + $0xc0] sm:$0xff]  ;;  %v83_v39 = vld [vmem:[%s2203_s29 + $0xc8] sm:$0xff]  ;;  %vm915_vm10 = vcmask 589312   ;;  %vm922_vm11 = vcmask 654912   ;;  %vm929_vm12 = vcmask 720512  }
  0x1c   :  { %v104_v40 = vpack.c.bf16 %v81_v37, %v80_v36  ;;  %v105_v41 = vpack.c.bf16 %v83_v39, %v82_v38  ;;  %v84_v42 = vld [vmem:[%s2203_s29 + $0xd0] sm:$0xff]  ;;  %v85_v43 = vld [vmem:[%s2203_s29 + $0xd8] sm:$0xff]  ;;  %v86_v44 = vld [vmem:[%s2203_s29 + $0xe0] sm:$0xff]  ;;  %vm936_vm13 = vcmask 786112   ;;  %vm943_vm14 = vcmask 851712  }
  0x1d   :  { %1330 = vmatmul.mubr.msk.bf16.gmra.mrb[8].mxu0 %vm121_vm0, %v98_v22  ;;  %v87_v45 = vld [vmem:[%s2203_s29 + $0xe8] sm:$0xff]  ;;  %v106_v46 = vpack.c.bf16 %v85_v43, %v84_v42  ;;  %v88_v48 = vld [vmem:[%s2203_s29 + $0xf0] sm:$0xff]  ;;  %v89_v49 = vld [vmem:[%s2203_s29 + $0xf8] sm:$0xff]  ;;  %vm950_vm15 = vcmask 917312  }
  0x1e   :  { %1333 = vmatprep.mubr.msk.bf16.mxu0 %vm121_vm0, %v99_v23  ;;  %v107_v47 = vpack.c.bf16 %v87_v45, %v86_v44  ;;  %v108_v50 = vpack.c.bf16 %v89_v49, %v88_v48  ;;  %v1409_v51 = vld [vmem:[%s2189_s5] sm:$0xff]   ;;  %v1410_v52 = vld [vmem:[%s2189_s5 + $0x8] sm:$0xff]  }
  0x1f   :  { %1353 = vmatprep.subr.bf16.mxu1 %v1409_v51  ;;  %v1411_v53 = vld [vmem:[%s2193_s9] sm:$0xff]  }
  0x20   :  { %1354 = vmatpush3.bf16.msra.mxu1 %v1409_v51  ;;  %v1062_v54 = vld [vmem:[%s2186_s2] sm:$0x3]  ;;  %1390 = vmatpush3.bf16.msra.mxu0 %v1411_v53 }
  0x21   :  { %1355 = vmatprep.subr.bf16.mxu1 %v1410_v52  ;;  %v1066_v56 = vpack.c.bf16 %v1062_v54, %v1062_v54  ;;  %v1804_v57 = vld [vmem:[%s2188_s4] ss:$0 sm:$0xff] }
  0x24   :  { %1356 = vmatpush3.bf16.msra.mxu1 %v1410_v52 }
  0x25   :  { %1334 = vmatmul.mubr.msk.bf16.gmra.mrb[12].mxu0 %vm121_vm0, %v100_v28  ;;  %1395 = vmatprep.subr.bf16.mxu1 %v1574_v55 }
  0x26   :  { %1337 = vmatprep.mubr.msk.bf16.mxu0 %vm121_vm0, %v101_v29 }
  0x2d   :  { %1338 = vmatmul.mubr.msk.bf16.gmra.mrb[16].mxu0 %vm121_vm0, %v102_v34 }
  0x2e   :  { %1341 = vmatprep.mubr.msk.bf16.mxu0 %vm121_vm0, %v103_v35 }
  0x35   :  { %1342 = vmatmul.mubr.msk.bf16.gmra.mrb[20].mxu0 %vm121_vm0, %v104_v40 }
  0x36   :  { %1345 = vmatprep.mubr.msk.bf16.mxu0 %vm121_vm0, %v105_v41 }
  0x3d   :  { %1346 = vmatmul.mubr.msk.bf16.gmra.mrb[24].mxu0 %vm121_vm0, %v106_v46 }
  0x3e   :  { %1349 = vmatprep.mubr.msk.bf16.mxu0 %vm121_vm0, %v107_v47 }
  0x45   :  { %1350 = vmatmul.mubr.msk.bf16.gmra.mrb[28].mxu0 %vm121_vm0, %v108_v50 }
  0x46   :  { %1391 = vmatprep.mubr.msk.bf16.mxu0 %vm1575_vm1, %v1574_v55 }
  0x4d   :  { %1392 = vmatmul.mubr.msk.bf16.vlgmr.msra.gmra.mrb[32].mxu0 %vm121_vm0, %v1066_v56  ;;  %vm957_vm0 = vcmask 982912  }
  0xe0   :  { %v1323_v58 = vpop.f32.mrb[0].mxu0 }
  0xe1   :  { %v213_v59 = vadd.f32 %v1323_v58, %v1804_v57  ;;  %v204_v60 = vpop.f32.mrb[1].mxu0 }
  0xe2   :  { %v205_v61 = vadd.f32 %v1804_v57, %v204_v60  ;;  %v1324_v62 = vpop.f32.mrb[2].mxu0 }
  0xe3   :  { %1414 = vtanh.f32 %v213_v59  ;;  %v216_v63 = vadd.f32 %v1324_v62, %v1804_v57  ;;  %v207_v0 = vpop.f32.mrb[3].mxu0 }
  0xe4   :  { %1416 = vtanh.f32 %v205_v61  ;;  %v208_v1 = vadd.f32 %v1804_v57, %v207_v0 }
  0xe5   :  { %1418 = vtanh.f32 %v216_v63 }
  0xe6   :  { %1420 = vtanh.f32 %v208_v1 }
  0xe8   :  { %v1327_v2 = vpop.f32.mrb[4].mxu0 }
  0xe9   :  { %v229_v3 = vadd.f32 %v1327_v2, %v1804_v57  ;;  %v220_v4 = vpop.f32.mrb[5].mxu0 }
  0xea   :  { %v221_v5 = vadd.f32 %v1804_v57, %v220_v4  ;;  %v1328_v6 = vpop.f32.mrb[6].mxu0 }
  0xeb   :  { %1422 = vtanh.f32 %v229_v3  ;;  %v232_v7 = vadd.f32 %v1328_v6, %v1804_v57  ;;  %v223_v8 = vpop.f32.mrb[7].mxu0 }
  0xec   :  { %1424 = vtanh.f32 %v221_v5  ;;  %v224_v9 = vadd.f32 %v1804_v57, %v223_v8 }
  0xed   :  { %v1415_v10 = vpop.eup %1414  ;;  %1426 = vtanh.f32 %v232_v7 }
  0xee   :  { %v1417_v11 = vpop.eup %1416  ;;  %1428 = vtanh.f32 %v224_v9 }
  0xef   :  { %v1419_v12 = vpop.eup %1418 }
  0xf0   :  { %v1421_v13 = vpop.eup %1420  ;;  %v1331_v14 = vpop.f32.mrb[8].mxu0  ;;  %v369_v15 = vpack.c.bf16 %v1419_v12, %v1415_v10 }
  0xf1   :  { %v245_v16 = vadd.f32 %v1331_v14, %v1804_v57  ;;  %v236_v17 = vpop.f32.mrb[9].mxu0  ;;  %v368_v18 = vpack.c.bf16 %v1421_v13, %v1417_v11 }
  0xf2   :  { %v237_v19 = vadd.f32 %v1804_v57, %v236_v17  ;;  %v1332_v20 = vpop.f32.mrb[10].mxu0 }
  0xf3   :  { %1430 = vtanh.f32 %v245_v16  ;;  %v248_v21 = vadd.f32 %v1332_v20, %v1804_v57  ;;  %v239_v22 = vpop.f32.mrb[11].mxu0  ;;  %1357 = vmatprep.mubr.msk.bf16.mxu1 %vm402_vm2, %v368_v18 }
  0xf4   :  { %1432 = vtanh.f32 %v237_v19  ;;  %v240_v23 = vadd.f32 %v1804_v57, %v239_v22  ;;  %1358 = vmatmul.mubr.msk.bf16.vlgmr.msra.gmra.mrb[0].mxu1 %vm402_vm2, %v369_v15 }
  0xf5   :  { %v1423_v24 = vpop.eup %1422  ;;  %1434 = vtanh.f32 %v248_v21 }
  0xf6   :  { %v1425_v25 = vpop.eup %1424  ;;  %1436 = vtanh.f32 %v240_v23 }
  0xf7   :  { %v1427_v26 = vpop.eup %1426 }
  0xf8   :  { %v1429_v27 = vpop.eup %1428  ;;  %v1335_v28 = vpop.f32.mrb[12].mxu0  ;;  %v371_v29 = vpack.c.bf16 %v1427_v26, %v1423_v24 }
  0xf9   :  { %v261_v30 = vadd.f32 %v1335_v28, %v1804_v57  ;;  %v252_v31 = vpop.f32.mrb[13].mxu0  ;;  %v370_v32 = vpack.c.bf16 %v1429_v27, %v1425_v25 }
  0xfa   :  { %v253_v33 = vadd.f32 %v1804_v57, %v252_v31  ;;  %v1336_v34 = vpop.f32.mrb[14].mxu0 }
  0xfb   :  { %1438 = vtanh.f32 %v261_v30  ;;  %v264_v35 = vadd.f32 %v1336_v34, %v1804_v57  ;;  %v255_v36 = vpop.f32.mrb[15].mxu0  ;;  %1361 = vmatprep.mubr.msk.bf16.mxu1 %vm402_vm2, %v370_v32 }
  0xfc   :  { %1440 = vtanh.f32 %v253_v33  ;;  %v256_v37 = vadd.f32 %v1804_v57, %v255_v36  ;;  %1362 = vmatmul.mubr.msk.bf16.gmra.mrb[4].mxu1 %vm402_vm2, %v371_v29 }
  0xfd   :  { %v1431_v38 = vpop.eup %1430  ;;  %1442 = vtanh.f32 %v264_v35 }
  0xfe   :  { %v1433_v39 = vpop.eup %1432  ;;  %1444 = vtanh.f32 %v256_v37 }
  0xff   :  { %v1435_v40 = vpop.eup %1434 }
 0x100   :  { %v1437_v41 = vpop.eup %1436  ;;  %v1339_v42 = vpop.f32.mrb[16].mxu0  ;;  %v373_v43 = vpack.c.bf16 %v1435_v40, %v1431_v38 }
 0x101   :  { %v277_v44 = vadd.f32 %v1339_v42, %v1804_v57  ;;  %v268_v45 = vpop.f32.mrb[17].mxu0  ;;  %v372_v46 = vpack.c.bf16 %v1437_v41, %v1433_v39 }
 0x102   :  { %v269_v47 = vadd.f32 %v1804_v57, %v268_v45  ;;  %v1340_v48 = vpop.f32.mrb[18].mxu0  ;;  %v1863_v45 = vld [vmem:[%s2190_s6] ss:$0 sm:$0xff] }
 0x103   :  { %1446 = vtanh.f32 %v277_v44  ;;  %v280_v49 = vadd.f32 %v1340_v48, %v1804_v57  ;;  %1365 = vmatprep.mubr.msk.bf16.mxu1 %vm402_vm2, %v372_v46  ;;  %v271_v50 = vpop.f32.mrb[19].mxu0  ;;  %v1412_v44 = vld [vmem:[%s2195_s11] sm:$0xff]  }
 0x104   :  { %1448 = vtanh.f32 %v269_v47  ;;  %v272_v51 = vadd.f32 %v1804_v57, %v271_v50  ;;  %1366 = vmatmul.mubr.msk.bf16.gmra.mrb[8].mxu1 %vm402_vm2, %v373_v43 }
 0x105   :  { %v1439_v52 = vpop.eup %1438  ;;  %1450 = vtanh.f32 %v280_v49  ;;  %1396 = vmatpush3.bf16.msra.mxu1 %v1412_v44 }
 0x106   :  { %v1441_v53 = vpop.eup %1440  ;;  %1452 = vtanh.f32 %v272_v51  ;;  %1397 = vmatprep.subr.bf16.mxu1 %v1574_v55 }
 0x107   :  { %v1443_v54 = vpop.eup %1442 }
 0x108   :  { %v1445_v56 = vpop.eup %1444  ;;  %v375_v58 = vpack.c.bf16 %v1443_v54, %v1439_v52  ;;  %v1343_v59 = vpop.f32.mrb[20].mxu0 }
 0x109   :  { %v374_v60 = vpack.c.bf16 %v1445_v56, %v1441_v53  ;;  %v293_v61 = vadd.f32 %v1343_v59, %v1804_v57  ;;  %v284_v62 = vpop.f32.mrb[21].mxu0 }
 0x10a   :  { %v285_v63 = vadd.f32 %v1804_v57, %v284_v62  ;;  %v1344_v0 = vpop.f32.mrb[22].mxu0 }
 0x10b   :  { %1369 = vmatprep.mubr.msk.bf16.mxu1 %vm402_vm2, %v374_v60  ;;  %1454 = vtanh.f32 %v293_v61  ;;  %v296_v1 = vadd.f32 %v1344_v0, %v1804_v57  ;;  %v287_v2 = vpop.f32.mrb[23].mxu0  ;;  %v1873_v60 = vld [vmem:[%s2191_s7] ss:$0 sm:$0xff] }
 0x10c   :  { %1370 = vmatmul.mubr.msk.bf16.gmra.mrb[12].mxu1 %vm402_vm2, %v375_v58  ;;  %1456 = vtanh.f32 %v285_v63  ;;  %v288_v3 = vadd.f32 %v1804_v57, %v287_v2 }
 0x10d   :  { %v1447_v4 = vpop.eup %1446  ;;  %1458 = vtanh.f32 %v296_v1 }
 0x10e   :  { %v1449_v5 = vpop.eup %1448  ;;  %1460 = vtanh.f32 %v288_v3 }
 0x10f   :  { %v1451_v6 = vpop.eup %1450 }
 0x110   :  { %v1453_v7 = vpop.eup %1452  ;;  %v377_v8 = vpack.c.bf16 %v1451_v6, %v1447_v4  ;;  %v1347_v9 = vpop.f32.mrb[24].mxu0 }
 0x111   :  { %v376_v10 = vpack.c.bf16 %v1453_v7, %v1449_v5  ;;  %v309_v11 = vadd.f32 %v1347_v9, %v1804_v57  ;;  %v300_v12 = vpop.f32.mrb[25].mxu0 }
 0x112   :  { %v301_v13 = vadd.f32 %v1804_v57, %v300_v12  ;;  %v1348_v14 = vpop.f32.mrb[26].mxu0 }
 0x113   :  { %1373 = vmatprep.mubr.msk.bf16.mxu1 %vm402_vm2, %v376_v10  ;;  %1462 = vtanh.f32 %v309_v11  ;;  %v312_v15 = vadd.f32 %v1348_v14, %v1804_v57  ;;  %v303_v16 = vpop.f32.mrb[27].mxu0 }
 0x114   :  { %1374 = vmatmul.mubr.msk.bf16.gmra.mrb[16].mxu1 %vm402_vm2, %v377_v8  ;;  %1464 = vtanh.f32 %v301_v13  ;;  %v304_v17 = vadd.f32 %v1804_v57, %v303_v16 }
 0x115   :  { %v1455_v18 = vpop.eup %1454  ;;  %1466 = vtanh.f32 %v312_v15 }
 0x116   :  { %v1457_v19 = vpop.eup %1456  ;;  %1468 = vtanh.f32 %v304_v17 }
 0x117   :  { %v1459_v20 = vpop.eup %1458 }
 0x118   :  { %v1461_v21 = vpop.eup %1460  ;;  %v379_v22 = vpack.c.bf16 %v1459_v20, %v1455_v18  ;;  %v1351_v23 = vpop.f32.mrb[28].mxu0 }
 0x119   :  { %v378_v24 = vpack.c.bf16 %v1461_v21, %v1457_v19  ;;  %v325_v25 = vadd.f32 %v1351_v23, %v1804_v57  ;;  %v316_v26 = vpop.f32.mrb[29].mxu0 }
 0x11a   :  { %v317_v27 = vadd.f32 %v1804_v57, %v316_v26  ;;  %v1352_v28 = vpop.f32.mrb[30].mxu0 }
 0x11b   :  { %1377 = vmatprep.mubr.msk.bf16.mxu1 %vm402_vm2, %v378_v24  ;;  %1470 = vtanh.f32 %v325_v25  ;;  %v328_v29 = vadd.f32 %v1352_v28, %v1804_v57  ;;  %v319_v30 = vpop.f32.mrb[31].mxu0 }
 0x11c   :  { %1378 = vmatmul.mubr.msk.bf16.gmra.mrb[20].mxu1 %vm402_vm2, %v379_v22  ;;  %1472 = vtanh.f32 %v317_v27  ;;  %v320_v31 = vadd.f32 %v1804_v57, %v319_v30  ;;  %v1576_v57 = vmov 0  }
 0x11d   :  { %v1463_v32 = vpop.eup %1462  ;;  %1474 = vtanh.f32 %v328_v29  ;;  %1407 = vset.pattern.permute.xlu0 %v1576_v57 }
 0x11e   :  { %v1465_v33 = vpop.eup %1464  ;;  %1476 = vtanh.f32 %v320_v31 }
 0x11f   :  { %v1467_v34 = vpop.eup %1466 }
 0x120   :  { %v1469_v35 = vpop.eup %1468  ;;  %v381_v36 = vpack.c.bf16 %v1467_v34, %v1463_v32 }
 0x121   :  { %v380_v37 = vpack.c.bf16 %v1469_v35, %v1465_v33 }
 0x123   :  { %1381 = vmatprep.mubr.msk.bf16.mxu1 %vm402_vm2, %v380_v37 }
 0x124   :  { %1382 = vmatmul.mubr.msk.bf16.gmra.mrb[24].mxu1 %vm402_vm2, %v381_v36 }
 0x125   :  { %v1471_v38 = vpop.eup %1470 }
 0x126   :  { %v1473_v39 = vpop.eup %1472 }
 0x127   :  { %v1475_v40 = vpop.eup %1474 }
 0x128   :  { %v1477_v41 = vpop.eup %1476  ;;  %v383_v42 = vpack.c.bf16 %v1475_v40, %v1471_v38 }
 0x129   :  { %v382_v43 = vpack.c.bf16 %v1477_v41, %v1473_v39 }
 0x12b   :  { %1385 = vmatprep.mubr.msk.bf16.mxu1 %vm402_vm2, %v382_v43 }
 0x12c   :  { %1386 = vmatmul.mubr.msk.bf16.gmra.mrb[28].mxu1 %vm402_vm2, %v383_v42 }
 0x12d   :  { %1399 = vmatprep.mubr.msk.bf16.mxu1 %vm1575_vm1, %v1574_v55  ;;  %vm964_vm1 = vcmask 1048512  }
 0x1c7   :  { %v1359_v46 = vpop.f32.mrb[0].mxu1 }
 0x1c8   :  { %v494_v47 = vadd.f32 %v1359_v46, %v1863_v45  ;;  %v485_v48 = vpop.f32.mrb[1].mxu1 }
 0x1c9   :  { %v486_v49 = vadd.f32 %v1863_v45, %v485_v48  ;;  %v1360_v50 = vpop.f32.mrb[2].mxu1 }
 0x1ca   :  { %1478 = vtanh.f32 %v494_v47  ;;  %v497_v51 = vadd.f32 %v1360_v50, %v1863_v45  ;;  %v488_v52 = vpop.f32.mrb[3].mxu1 }
 0x1cb   :  { %1480 = vtanh.f32 %v486_v49  ;;  %v489_v55 = vadd.f32 %v1863_v45, %v488_v52 }
 0x1cc   :  { %1482 = vtanh.f32 %v497_v51 }
 0x1cd   :  { %1484 = vtanh.f32 %v489_v55 }
 0x1cf   :  { %v1363_v53 = vpop.f32.mrb[4].mxu1 }
 0x1d0   :  { %v501_v54 = vpop.f32.mrb[5].mxu1  ;;  %v510_v58 = vadd.f32 %v1363_v53, %v1863_v45 }
 0x1d1   :  { %v1364_v56 = vpop.f32.mrb[6].mxu1  ;;  %v502_v63 = vadd.f32 %v1863_v45, %v501_v54 }
 0x1d2   :  { %v504_v59 = vpop.f32.mrb[7].mxu1  ;;  %1486 = vtanh.f32 %v510_v58  ;;  %v513_v7 = vadd.f32 %v1364_v56, %v1863_v45 }
 0x1d3   :  { %1488 = vtanh.f32 %v502_v63  ;;  %v505_v15 = vadd.f32 %v1863_v45, %v504_v59 }
 0x1d4   :  { %v1479_v61 = vpop.eup %1478 }
 0x1d5   :  { %v1481_v62 = vpop.eup %1480  ;;  %v654_v0 = vmul.f32 %v1479_v61, %v1873_v60 }
 0x1d6   :  { %v652_v3 = vmul.f32 %v1481_v62, %v1873_v60  ;;  %v1483_v4 = vpop.eup %1482 }
 0x1d7   :  { %v1367_v1 = vpop.f32.mrb[8].mxu1  ;;  %v690_v2 = vsel %vm402_vm2, %v654_v0, 0.0  ;;  %v655_v13 = vmul.f32 %v1483_v4, %v1873_v60  ;;  %v1485_v14 = vpop.eup %1484 }
 0x1d8   :  { %v526_v5 = vadd.f32 %v1367_v1, %v1863_v45  ;;  %691 = vadd.xlane.f32.xlu0 %v690_v2  ;;  %v517_v6 = vpop.f32.mrb[9].mxu1  ;;  %v684_v12 = vsel %vm402_vm2, %v652_v3, 0.0  ;;  %v653_v18 = vmul.f32 %v1485_v14, %v1873_v60 }
 0x1d9   :  { %v1368_v8 = vpop.f32.mrb[10].mxu1  ;;  %v693_v17 = vsel %vm402_vm2, %v655_v13, 0.0  ;;  %v518_v22 = vadd.f32 %v1863_v45, %v517_v6 }
 0x1da   :  { %1490 = vtanh.f32 %v526_v5  ;;  %v529_v9 = vadd.f32 %v1368_v8, %v1863_v45  ;;  %v520_v10 = vpop.f32.mrb[11].mxu1  ;;  %v687_v28 = vsel %vm402_vm2, %v653_v18, 0.0 }
 0x1db   :  { %v521_v11 = vadd.f32 %v1863_v45, %v520_v10 }
 0x1dc   :  { %1492 = vtanh.f32 %v529_v9  ;;  %685 = vadd.xlane.f32.xlu0 %v684_v12  ;;  %v1487_v19 = vpop.eup %1486 }
 0x1dd   :  { %1494 = vtanh.f32 %v513_v7  ;;  %v1489_v27 = vpop.eup %1488  ;;  %v658_v29 = vmul.f32 %v1487_v19, %v1873_v60 }
 0x1de   :  { %1496 = vtanh.f32 %v521_v11  ;;  %v656_v39 = vmul.f32 %v1489_v27, %v1873_v60  ;;  %v1413_v11 = vld [vmem:[%s2195_s11 + $0x8] sm:$0xff]  }
 0x1df   :  { %v1371_v16 = vpop.f32.mrb[12].mxu1  ;;  %1498 = vtanh.f32 %v505_v15  ;;  %v702_v37 = vsel %vm402_vm2, %v658_v29, 0.0  ;;  %1398 = vmatpush3.bf16.msra.mxu1 %v1413_v11 }
 0x1e0   :  { %v542_v20 = vadd.f32 %v1371_v16, %v1863_v45  ;;  %v533_v21 = vpop.f32.mrb[13].mxu1  ;;  %694 = vadd.xlane.f32.xlu0 %v693_v17  ;;  %v696_v47 = vsel %vm402_vm2, %v656_v39, 0.0 }
 0x1e1   :  { %v1372_v23 = vpop.f32.mrb[14].mxu1  ;;  %v534_v24 = vadd.f32 %v1863_v45, %v533_v21 }
 0x1e2   :  { %1500 = vtanh.f32 %v542_v20  ;;  %v545_v25 = vadd.f32 %v1372_v23, %v1863_v45  ;;  %v536_v26 = vpop.f32.mrb[15].mxu1 }
 0x1e3   :  { %v537_v33 = vadd.f32 %v1863_v45, %v536_v26 }
 0x1e4   :  { %v1491_v30 = vpop.eup %1490  ;;  %1502 = vtanh.f32 %v545_v25  ;;  %688 = vadd.xlane.f32.xlu0 %v687_v28 }
 0x1e5   :  { %1504 = vtanh.f32 %v518_v22  ;;  %v662_v31 = vmul.f32 %v1491_v30, %v1873_v60 }
 0x1e6   :  { %v1493_v32 = vpop.eup %1492  ;;  %1506 = vtanh.f32 %v534_v24 }
 0x1e7   :  { %v1495_v34 = vpop.eup %1494  ;;  %v714_v35 = vsel %vm402_vm2, %v662_v31, 0.0  ;;  %v1375_v36 = vpop.f32.mrb[16].mxu1  ;;  %v663_v38 = vmul.f32 %v1493_v32, %v1873_v60  ;;  %1508 = vtanh.f32 %v537_v33 }
 0x1e8   :  { %v1497_v40 = vpop.eup %1496  ;;  %715 = vadd.xlane.f32.xlu1 %v714_v35  ;;  %703 = vadd.xlane.f32.xlu0 %v702_v37  ;;  %v549_v41 = vpop.f32.mrb[17].mxu1  ;;  %v558_v43 = vadd.f32 %v1375_v36, %v1863_v45  ;;  %v659_v49 = vmul.f32 %v1495_v34, %v1873_v60 }
 0x1e9   :  { %v1376_v42 = vpop.f32.mrb[18].mxu1  ;;  %v1499_v44 = vpop.eup %1498  ;;  %v717_v46 = vsel %vm402_vm2, %v663_v38, 0.0  ;;  %v661_v48 = vmul.f32 %v1497_v40, %v1873_v60  ;;  %v550_v52 = vadd.f32 %v1863_v45, %v549_v41  ;;  %v1270_v41 = vld [vmem:[%s2194_s10] ss:$0 sm:$0xff] }
 0x1ea   :  { %v552_v57 = vpop.f32.mrb[19].mxu1  ;;  %1510 = vtanh.f32 %v558_v43  ;;  %v657_v55 = vmul.f32 %v1499_v44, %v1873_v60  ;;  %v705_v56 = vsel %vm402_vm2, %v659_v49, 0.0  ;;  %v561_v1 = vadd.f32 %v1376_v42, %v1863_v45  ;;  %v1116_v42 = vpop.f32.mrb[32].mxu0 }
 0x1eb   :  { %v711_v54 = vsel %vm402_vm2, %v661_v48, 0.0  ;;  %1512 = vtanh.f32 %v550_v52  ;;  %v553_v10 = vadd.f32 %v1863_v45, %v552_v57  ;;  %v1117_v44 = vadd.f32 %v1270_v41, %v1116_v42 }
 0x1ec   :  { %v1501_v50 = vpop.eup %1500  ;;  %718 = vadd.xlane.f32.xlu1 %v717_v46  ;;  %697 = vadd.xlane.f32.xlu0 %v696_v47  ;;  %v699_v2 = vsel %vm402_vm2, %v657_v55, 0.0  ;;  %v1393_v46 = vpop.f32.mrb[33].mxu0 }
 0x1ed   :  { %v666_v58 = vmul.f32 %v1501_v50, %v1873_v60 }
 0x1ee   :  { %v1503_v51 = vpop.eup %1502 }
 0x1ef   :  { %v1505_v53 = vpop.eup %1504  ;;  %v1379_v59 = vpop.f32.mrb[20].mxu1  ;;  %v1911_v61 = vmul.f32 %v1503_v51, %v1873_v60  ;;  %v726_v5 = vsel %vm402_vm2, %v666_v58, 0.0 }
 0x1f0   :  { %v1507_v62 = vpop.eup %1506  ;;  %712 = vadd.xlane.f32.xlu1 %v711_v54  ;;  %706 = vadd.xlane.f32.xlu0 %v705_v56  ;;  %v565_v63 = vpop.f32.mrb[21].mxu1  ;;  %v660_v7 = vmul.f32 %v1505_v53, %v1873_v60  ;;  %v574_v21 = vadd.f32 %v1379_v59, %v1863_v45 }
 0x1f1   :  { %v1380_v0 = vpop.f32.mrb[22].mxu1  ;;  %v664_v6 = vmul.f32 %v1507_v62, %v1873_v60  ;;  %v1509_v9 = vpop.eup %1508  ;;  %v566_v28 = vadd.f32 %v1863_v45, %v565_v63 }
 0x1f2   :  { %v577_v3 = vadd.f32 %v1380_v0, %v1863_v45  ;;  %v568_v4 = vpop.f32.mrb[23].mxu1  ;;  %v708_v13 = vsel %vm402_vm2, %v660_v7, 0.0  ;;  %v665_v14 = vmul.f32 %v1509_v9, %v1873_v60  ;;  %v1119_v51 = vpop.f32.mrb[34].mxu0 }
 0x1f3   :  { %v569_v8 = vadd.f32 %v1863_v45, %v568_v4  ;;  %v720_v12 = vsel %vm402_vm2, %v664_v6, 0.0  ;;  %v1394_v55 = vpop.f32.mrb[35].mxu0  ;;  %v1269_v4 = vld [vmem:[#allocation2] ss:$0 sm:$0xff] }
 0x1f4   :  { %727 = vadd.xlane.f32.xlu1 %v726_v5  ;;  %700 = vadd.xlane.f32.xlu0 %v699_v2  ;;  %1514 = vtanh.f32 %v577_v3  ;;  %v1511_v16 = vpop.eup %1510  ;;  %v723_v24 = vsel %vm402_vm2, %v665_v14, 0.0 }
 0x1f5   :  { %1516 = vtanh.f32 %v569_v8  ;;  %v670_v25 = vmul.f32 %v1511_v16, %v1873_v60  ;;  %v1513_v27 = vpop.eup %1512 }
 0x1f6   :  { %1518 = vtanh.f32 %v561_v1  ;;  %v668_v32 = vmul.f32 %v1513_v27, %v1873_v60 }
 0x1f7   :  { %v1383_v15 = vpop.f32.mrb[24].mxu1  ;;  %1520 = vtanh.f32 %v553_v10  ;;  %v738_v31 = vsel %vm402_vm2, %v670_v25, 0.0  ;;  %v729_v25 = vsel %vm402_vm2, %v1911_v61, 0.0 }
 0x1f8   :  { %721 = vadd.xlane.f32.xlu1 %v720_v12  ;;  %709 = vadd.xlane.f32.xlu0 %v708_v13  ;;  %v590_v17 = vadd.f32 %v1383_v15, %v1863_v45  ;;  %v581_v18 = vpop.f32.mrb[25].mxu1  ;;  %v732_v48 = vsel %vm402_vm2, %v668_v32, 0.0 }
 0x1f9   :  { %v582_v19 = vadd.f32 %v1863_v45, %v581_v18  ;;  %v1384_v20 = vpop.f32.mrb[26].mxu1 }
 0x1fa   :  { %1522 = vtanh.f32 %v590_v17  ;;  %v593_v22 = vadd.f32 %v1384_v20, %v1863_v45  ;;  %v584_v23 = vpop.f32.mrb[27].mxu1 }
 0x1fb   :  { %1524 = vtanh.f32 %v582_v19  ;;  %v585_v26 = vadd.f32 %v1863_v45, %v584_v23 }
 0x1fc   :  { %724 = vadd.xlane.f32.xlu1 %v723_v24  ;;  %1526 = vtanh.f32 %v593_v22 }
 0x1fd   :  { %1528 = vtanh.f32 %v585_v26 }
 0x1fe   :  { %v1515_v29 = vpop.eup %1514  ;;  %1530 = vtanh.f32 %v574_v21 }
 0x1ff   :  { %v1517_v30 = vpop.eup %1516  ;;  %v675_v33 = vmul.f32 %v1515_v29, %v1873_v60  ;;  %v1387_v34 = vpop.f32.mrb[28].mxu1  ;;  %1532 = vtanh.f32 %v566_v28 }
 0x200   :  { %v1519_v35 = vpop.eup %1518  ;;  %739 = vadd.xlane.f32.xlu1 %v738_v31  ;;  %v606_v36 = vadd.f32 %v1387_v34, %v1863_v45  ;;  %v597_v37 = vpop.f32.mrb[29].mxu1  ;;  %v673_v38 = vmul.f32 %v1517_v30, %v1873_v60 }
 0x201   :  { %v598_v39 = vadd.f32 %v1863_v45, %v597_v37  ;;  %v1388_v40 = vpop.f32.mrb[30].mxu1  ;;  %v1521_v47 = vpop.eup %1520  ;;  %v671_v49 = vmul.f32 %v1519_v35, %v1873_v60  ;;  %v753_v19 = vsel %vm402_vm2, %v675_v33, 0.0 }
 0x202   :  { %1534 = vtanh.f32 %v606_v36  ;;  %v609_v43 = vadd.f32 %v1388_v40, %v1863_v45  ;;  %v600_v57 = vpop.f32.mrb[31].mxu1  ;;  %v669_v63 = vmul.f32 %v1521_v47, %v1873_v60  ;;  %v747_v20 = vsel %vm402_vm2, %v673_v38, 0.0 }
 0x203   :  { %1536 = vtanh.f32 %v598_v39  ;;  %v601_v50 = vadd.f32 %v1863_v45, %v600_v57  ;;  %v741_v62 = vsel %vm402_vm2, %v671_v49, 0.0  ;;  %v855_v38 = vlaneseq }
 0x204   :  { %v1523_v52 = vpop.eup %1522  ;;  %733 = vadd.xlane.f32.xlu1 %v732_v48  ;;  %1538 = vtanh.f32 %v609_v43  ;;  %v735_v3 = vsel %vm402_vm2, %v669_v63, 0.0 }
 0x205   :  { %v1525_v53 = vpop.eup %1524  ;;  %1540 = vtanh.f32 %v601_v50  ;;  %v678_v54 = vmul.f32 %v1523_v52, %v1873_v60  ;;  %v1984_v40 = vand.u32 127, %v855_v38  ;;  %v1988_v43 = vshrl.u32 %v855_v38, 7 }
 0x206   :  { %v1527_v56 = vpop.eup %1526  ;;  %v676_v58 = vmul.f32 %v1525_v53, %v1873_v60  ;;  %1542 = vtanh.f32 %v1117_v44 }
 0x207   :  { %v1529_v59 = vpop.eup %1528  ;;  %v679_v45 = vmul.f32 %v1527_v56, %v1873_v60  ;;  %v762_v21 = vsel %vm402_vm2, %v678_v54, 0.0  ;;  %v875_v57 = vadd.s32 4294967272, %v1984_v40  ;;  %v861_v44 = vadd.s32 4294967288, %v1984_v40 }
 0x208   :  { %v1531_v0 = vpop.eup %1530  ;;  %742 = vadd.xlane.f32.xlu1 %v741_v62  ;;  %v677_v1 = vmul.f32 %v1529_v59, %v1873_v60  ;;  %v756_v22 = vsel %vm402_vm2, %v676_v58, 0.0  ;;  %v868_v46 = vadd.s32 4294967280, %v1984_v40  ;;  %v896_v47 = vadd.s32 4294967248, %v1984_v40 }
 0x209   :  { %v1533_v2 = vpop.eup %1532  ;;  %v674_v5 = vmul.f32 %v1531_v0, %v1873_v60  ;;  %v882_v48 = vadd.s32 4294967264, %v1984_v40  ;;  %v903_v49 = vadd.s32 4294967240, %v1984_v40  ;;  %v889_v50 = vadd.s32 4294967256, %v1984_v40 }
 0x20a   :  { %v672_v13 = vmul.f32 %v1533_v2, %v1873_v60  ;;  %v759_v24 = vsel %vm402_vm2, %v677_v1, 0.0  ;;  %v2001_v55 = vsub.s32 %v1984_v40, %v1988_v43  ;;  %v924_v53 = vadd.s32 4294967216, %v1984_v40 }
 0x20b   :  { %v750_v12 = vsel %vm402_vm2, %v674_v5, 0.0  ;;  %v910_v54 = vadd.s32 4294967232, %v1984_v40  ;;  %v2006_v56 = vsub.s32 %v875_v57, %v1988_v43  ;;  %v2009_v58 = vsub.s32 %v861_v44, %v1988_v43 }
 0x20c   :  { %v1535_v6 = vpop.eup %1534  ;;  %736 = vadd.xlane.f32.xlu1 %v735_v3  ;;  %v744_v18 = vsel %vm402_vm2, %v672_v13, 0.0  ;;  %v2012_v59 = vsub.s32 %v868_v46, %v1988_v43  ;;  %v2015_v62 = vsub.s32 %v896_v47, %v1988_v43  ;;  %v2018_v63 = vsub.s32 %v882_v48, %v1988_v43 }
 0x20d   :  { %v1537_v7 = vpop.eup %1536  ;;  %v682_v8 = vmul.f32 %v1535_v6, %v1873_v60  ;;  %v931_v0 = vadd.s32 4294967208, %v1984_v40  ;;  %v917_v1 = vadd.s32 4294967224, %v1984_v40  ;;  %v2026_v2 = vsub.s32 %v889_v50, %v1988_v43 }
 0x20e   :  { %v1539_v9 = vpop.eup %1538  ;;  %786 = vperm.xlu0 %1407, %v1269_v4   ;;  %v680_v10 = vmul.f32 %v1537_v7, %v1873_v60  ;;  %v2033_v5 = vsub.s32 %v924_v53, %v1988_v43  ;;  %v2036_v6 = vsub.s32 %v910_v54, %v1988_v43  ;;  %v952_v7 = vadd.s32 4294967184, %v1984_v40 }
 0x20f   :  { %v1541_v11 = vpop.eup %1540  ;;  %v683_v14 = vmul.f32 %v1539_v9, %v1873_v60  ;;  %v774_v23 = vsel %vm402_vm2, %v682_v8, 0.0  ;;  %v2045_v13 = vsub.s32 %v931_v0, %v1988_v43 }
 0x210   :  { %v1543_v15 = vpop.eup %1542  ;;  %751 = vadd.xlane.f32.xlu1 %v750_v12  ;;  %v681_v16 = vmul.f32 %v1541_v11, %v1873_v60  ;;  %v765_v60 = vsel %vm402_vm2, %v679_v45, 0.0  ;;  %v768_v26 = vsel %vm402_vm2, %v680_v10, 0.0  ;;  %v2021_v45 = vsub.s32 %v903_v49, %v1988_v43 }
 0x211   :  { %v1128_v17 = vpack.c.bf16 %v1543_v15, %v1543_v15  ;;  %v777_v28 = vsel %vm402_vm2, %v683_v14, 0.0  ;;  %v2048_v14 = vsub.s32 %v917_v1, %v1988_v43  ;;  %v938_v15 = vadd.s32 4294967200, %v1984_v40 }
 0x212   :  { %v771_v27 = vsel %vm402_vm2, %v681_v16, 0.0 }
 0x213   :  { %1400 = vmatmul.mubr.msk.bf16.vlgmr.msra.gmra.mrb[32].mxu1 %vm402_vm2, %v1128_v17  ;;  %vm1045_vm2 = vcmask 1041409  }
 0x214   :  { %745 = vadd.xlane.f32.xlu1 %v744_v18 }
 0x218   :  { %754 = vadd.xlane.f32.xlu1 %v753_v19  ;;  %v945_v19 = vadd.s32 4294967192, %v1984_v40 }
 0x21c   :  { %748 = vadd.xlane.f32.xlu1 %v747_v20 }
 0x220   :  { %763 = vadd.xlane.f32.xlu1 %v762_v21 }
 0x224   :  { %757 = vadd.xlane.f32.xlu1 %v756_v22  ;;  %v2057_v22 = vsub.s32 %v952_v7, %v1988_v43 }
 0x228   :  { %766 = vadd.xlane.f32.xlu1 %v765_v60 }
 0x22c   :  { %760 = vadd.xlane.f32.xlu1 %v759_v24 }
 0x22d   :  { %775 = vadd.xlane.f32.xlu0 %v774_v23 }
 0x230   :  { %730 = vadd.xlane.f32.xlu1 %v729_v25 }
 0x234   :  { %769 = vadd.xlane.f32.xlu1 %v768_v26 }
 0x238   :  { %772 = vadd.xlane.f32.xlu1 %v771_v27 }
 0x23c   :  { %778 = vadd.xlane.f32.xlu1 %v777_v28 }
 0x265   :  { %v692_v29 = vpop.xlane.xlu0 %691 }
 0x269   :  { %v686_v30 = vpop.xlane.xlu0 %685 }
 0x26d   :  { %v695_v31 = vpop.xlane.xlu0 %694 }
 0x271   :  { %v689_v32 = vpop.xlane.xlu0 %688 }
 0x275   :  { %v1976_v33 = vpop.xlane.xlu1 %715  ;;  %v704_v34 = vpop.xlane.xlu0 %703 }
 0x279   :  { %v1978_v35 = vpop.xlane.xlu1 %718  ;;  %v698_v61 = vpop.xlane.xlu0 %697 }
 0x27d   :  { %v1980_v36 = vpop.xlane.xlu1 %712  ;;  %v707_v37 = vpop.xlane.xlu0 %706 }
 0x281   :  { %v1982_v39 = vpop.xlane.xlu1 %727  ;;  %v701_v41 = vpop.xlane.xlu0 %700 }
 0x285   :  { %v1986_v42 = vpop.xlane.xlu1 %721  ;;  %v710_v51 = vpop.xlane.xlu0 %709 }
 0x289   :  { %v1997_v52 = vpop.xlane.xlu1 %724 }
 0x28d   :  { %v2028_v3 = vpop.xlane.xlu1 %739  ;;  %v2030_v4 = vpop.permute.xlu0 %786 }
 0x28e   :  { %v789_v8 = vadd.f32 %v2030_v4, %v686_v30  ;;  %v792_v9 = vadd.f32 %v2030_v4, %v695_v31  ;;  %v790_v10 = vadd.f32 %v2030_v4, %v689_v32  ;;  %v791_v11 = vadd.f32 %v2030_v4, %v692_v29 }
 0x28f   :  { %v793_v12 = vadd.f32 %v2030_v4, %v698_v61  ;;  %v795_v21 = vadd.f32 %v2030_v4, %v704_v34  ;;  %v796_v24 = vadd.f32 %v2030_v4, %v707_v37  ;;  %v794_v25 = vadd.f32 %v2030_v4, %v701_v41 }
 0x290   :  { %v860_v16 = vrot.slane %v789_v8, %v2001_v55  ;;  %v865_v17 = vrot.slane %v790_v10, %v2009_v58  ;;  %v872_v18 = vrot.slane %v791_v11, %v2012_v59  ;;  %v879_v60 = vrot.slane %v792_v9, %v2006_v56 }
 0x291   :  { %v734_v20 = vpop.xlane.xlu1 %733  ;;  %v886_v27 = vrot.slane %v793_v12, %v2018_v63  ;;  %v797_v28 = vadd.f32 %v2030_v4, %v710_v51  ;;  %v2067_v29 = vsub.s32 %v938_v15, %v1988_v43  ;;  %v893_v31 = vrot.slane %v794_v25, %v2026_v2 }
 0x292   :  { %v867_v23 = vsel %vm866_vm3, %v865_v17, %v860_v16  ;;  %v798_v32 = vadd.f32 %v2030_v4, %v1980_v36  ;;  %v2074_v34 = vsub.s32 %v945_v19, %v1988_v43  ;;  %v900_v37 = vrot.slane %v795_v21, %v2015_v62 }
 0x293   :  { %v874_v26 = vsel %vm873_vm4, %v872_v18, %v867_v23  ;;  %v799_v41 = vadd.f32 %v2030_v4, %v1976_v33  ;;  %v907_v57 = vrot.slane %v796_v24, %v2021_v45  ;;  %v800_v36 = vadd.f32 %v2030_v4, %v1978_v35 }
 0x294   :  { %v881_v30 = vsel %vm880_vm5, %v879_v60, %v874_v26  ;;  %v914_v47 = vrot.slane %v797_v28, %v2036_v6  ;;  %v801_v48 = vadd.f32 %v2030_v4, %v1986_v42  ;;  %v921_v33 = vrot.slane %v798_v32, %v2048_v14 }
 0x295   :  { %v743_v61 = vpop.xlane.xlu1 %742  ;;  %v888_v38 = vsel %vm887_vm6, %v886_v27, %v881_v30  ;;  %v802_v50 = vadd.f32 %v2030_v4, %v1997_v52  ;;  %v928_v53 = vrot.slane %v799_v41, %v2033_v5  ;;  %v803_v54 = vadd.f32 %v2030_v4, %v1982_v39 }
 0x296   :  { %v895_v44 = vsel %vm894_vm7, %v893_v31, %v888_v38  ;;  %v935_v0 = vrot.slane %v800_v36, %v2045_v13  ;;  %v942_v7 = vrot.slane %v801_v48, %v2067_v29  ;;  %v805_v19 = vadd.f32 %v2030_v4, %v734_v20 }
 0x297   :  { %v902_v46 = vsel %vm901_vm8, %v900_v37, %v895_v44  ;;  %v949_v8 = vrot.slane %v802_v50, %v2074_v34  ;;  %v956_v10 = vrot.slane %v803_v54, %v2057_v22  ;;  %v807_v23 = vadd.f32 %v2030_v4, %v2028_v3 }
 0x298   :  { %v909_v49 = vsel %vm908_vm9, %v907_v57, %v902_v46  ;;  %v969_v24 = vrot.slane %v805_v19, %v2001_v55  ;;  %v808_v27 = vadd.f32 %v2030_v4, %v743_v61 }
 0x299   :  { %v737_v51 = vpop.xlane.xlu1 %736  ;;  %v916_v35 = vsel %vm915_vm10, %v914_v47, %v909_v49  ;;  %v978_v31 = vrot.slane %v807_v23, %v2012_v59 }
 0x29a   :  { %v923_v42 = vsel %vm922_vm11, %v921_v33, %v916_v35  ;;  %v806_v18 = vadd.f32 %v2030_v4, %v737_v51  ;;  %v983_v3 = vrot.slane %v808_v27, %v2006_v56  ;;  %v959_v35 = vadd.s32 4294967176, %v1984_v40 }
 0x29b   :  { %v930_v1 = vsel %vm929_vm12, %v928_v53, %v923_v42 }
 0x29c   :  { %v937_v52 = vsel %vm936_vm13, %v935_v0, %v930_v1  ;;  %v973_v60 = vrot.slane %v806_v18, %v2009_v58 }
 0x29d   :  { %v752_v9 = vpop.xlane.xlu1 %751  ;;  %v944_v39 = vsel %vm943_vm14, %v942_v7, %v937_v52  ;;  %v962_v7 = vsub.s32 %v959_v35, %v1988_v43  ;;  %v821_v43 = vld [vmem:[%s2185_s1] sm:$0x3] }
 0x29e   :  { %v951_v11 = vsel %vm950_vm15, %v949_v8, %v944_v39  ;;  %v974_v28 = vsel %vm866_vm3, %v973_v60, %v969_v24  ;;  %v811_v37 = vadd.f32 %v2030_v4, %v752_v9  ;;  %vm822_vm3 = vcmp.ne.s32.totalorder %v821_v43, 0 }
 0x29f   :  { %v2106_v12 = vsel %vm957_vm0, %v956_v10, %v951_v11  ;;  %v979_v20 = vsel %vm873_vm4, %v978_v31, %v974_v28  ;;  %vm1049_vm4 = vcmask 1041408   ;;  %v1277_v31 = vld [vmem:[%s2197_s13] ss:$0 sm:$0xff]  ;;  %s1219_s13 = sshll.u32 %s1577_s23, 4  ;;  %s1220_s13 = int_to_ptr.vmem [resolvable:$true] %s1219_s13 }
 0x2a0   :  { %v984_v38 = vsel %vm880_vm5, %v983_v3, %v979_v20  ;;  %v998_v36 = vrot.slane %v811_v37, %v2015_v62  ;;  %vm1200_vm5 = vcmask 254976   ;;  %v1278_v37 = vld [vmem:[#allocation3] ss:$0 sm:$0xff]  ;;  %s1550_s24 = scalar_lea.vmem %s1220_s13, 32  ;;  %p1555_p1 = scmp.lt.s32.totalorder %s1220_s13, %s1220_s13 }
 0x2a1   :  { %v746_v15 = vpop.xlane.xlu1 %745  ;;  %p1551_p0 = scmp.ne.s32.totalorder %s1220_s13, %s1550_s24  ;;  %p1556_p2 = scmp.lt.s32.totalorder %s1550_s24, %s1550_s24 }
 0x2a2   :  { %v809_v25 = vadd.f32 %v2030_v4, %v746_v15 }
 0x2a3   :  { %p1557_p3 = por %p1556_p2, %p1555_p1 }
 0x2a4   :  { %v988_v58 = vrot.slane %v809_v25, %v2018_v63 }
 0x2a5   :  { %v755_v16 = vpop.xlane.xlu1 %754  ;;  %p1558_p4 = pnand %p1557_p3, %p1551_p0 }
 0x2a6   :  { %v989_v61 = vsel %vm887_vm6, %v988_v58, %v984_v38  ;;  %v812_v59 = vadd.f32 %v2030_v4, %v755_v16  ;;  %vm1211_vm6 = vcmask 1024  }
 0x2a8   :  { %v1003_v47 = vrot.slane %v812_v59, %v2021_v45 }
 0x2a9   :  { %v749_v17 = vpop.xlane.xlu1 %748 }
 0x2aa   :  { %v810_v30 = vadd.f32 %v2030_v4, %v749_v17 }
 0x2ac   :  { %v993_v55 = vrot.slane %v810_v30, %v2026_v2 }
 0x2ad   :  { %v764_v21 = vpop.xlane.xlu1 %763 }
 0x2ae   :  { %v994_v44 = vsel %vm894_vm7, %v993_v55, %v989_v61  ;;  %v815_v49 = vadd.f32 %v2030_v4, %v764_v21 }
 0x2af   :  { %v999_v56 = vsel %vm901_vm8, %v998_v36, %v994_v44 }
 0x2b0   :  { %v1004_v33 = vsel %vm908_vm9, %v1003_v47, %v999_v56  ;;  %v1018_v54 = vrot.slane %v815_v49, %v2033_v5 }
 0x2b1   :  { %v758_v26 = vpop.xlane.xlu1 %757 }
 0x2b2   :  { %v813_v41 = vadd.f32 %v2030_v4, %v758_v26 }
 0x2b4   :  { %v1008_v2 = vrot.slane %v813_v41, %v2036_v6 }
 0x2b5   :  { %v767_v32 = vpop.xlane.xlu1 %766 }
 0x2b6   :  { %v1009_v50 = vsel %vm915_vm10, %v1008_v2, %v1004_v33  ;;  %v816_v53 = vadd.f32 %v2030_v4, %v767_v32 }
 0x2b8   :  { %v1023_v1 = vrot.slane %v816_v53, %v2045_v13 }
 0x2b9   :  { %v761_v57 = vpop.xlane.xlu1 %760 }
 0x2ba   :  { %v814_v63 = vadd.f32 %v2030_v4, %v761_v57  ;;  %v776_v45 = vpop.xlane.xlu0 %775 }
 0x2bb   :  { %v819_v40 = vadd.f32 %v2030_v4, %v776_v45 }
 0x2bc   :  { %v1013_v48 = vrot.slane %v814_v63, %v2048_v14 }
 0x2bd   :  { %v731_v46 = vpop.xlane.xlu1 %730  ;;  %v1038_v15 = vrot.slane %v819_v40, %v2057_v22  ;;  %v1273_v22 = vld [vmem:[%s2196_s12] ss:$0 sm:$0xff] }
 0x2be   :  { %v1014_v62 = vsel %vm922_vm11, %v1013_v48, %v1009_v50  ;;  %v804_v52 = vadd.f32 %v2030_v4, %v731_v46 }
 0x2bf   :  { %v1019_v14 = vsel %vm929_vm12, %v1018_v54, %v1014_v62 }
 0x2c0   :  { %v1024_v9 = vsel %vm936_vm13, %v1023_v1, %v1019_v14  ;;  %v963_v11 = vrot.slane %v804_v52, %v962_v7 }
 0x2c1   :  { %v770_v51 = vpop.xlane.xlu1 %769 }
 0x2c2   :  { %v817_v6 = vadd.f32 %v2030_v4, %v770_v51  ;;  %v965_v17 = vsel %vm964_vm1, %v963_v11, %v2106_v12 }
 0x2c4   :  { %v1028_v0 = vrot.slane %v817_v6, %v2067_v29 }
 0x2c5   :  { %v773_v42 = vpop.xlane.xlu1 %772 }
 0x2c6   :  { %v818_v8 = vadd.f32 %v2030_v4, %v773_v42  ;;  %v1029_v10 = vsel %vm943_vm14, %v1028_v0, %v1024_v9 }
 0x2c8   :  { %v1033_v5 = vrot.slane %v818_v8, %v2074_v34 }
 0x2c9   :  { %v779_v39 = vpop.xlane.xlu1 %778 }
 0x2ca   :  { %v1034_v29 = vsel %vm950_vm15, %v1033_v5, %v1029_v10  ;;  %v820_v13 = vadd.f32 %v2030_v4, %v779_v39 }
 0x2cb   :  { %v1039_v34 = vsel %vm957_vm0, %v1038_v15, %v1034_v29 }
 0x2cc   :  { %v1043_v16 = vrot.slane %v820_v13, %v962_v7 }
 0x2ce   :  { %v1044_v18 = vsel %vm964_vm1, %v1043_v16, %v1039_v34 }
 0x2cf   :  { %v1046_v19 = vsel %vm1045_vm2, %v1044_v18, %v965_v17 }
 0x2d0   :  { %v1048_v21 = vsel %vm822_vm3, -inf, %v1046_v19 }
 0x2d1   :  { %v1050_v4 = vsel %vm1049_vm4, %v1048_v21, -inf }
 0x2d2   :  { %1051 = vmax.xlane.f32.xlu1 %v1050_v4 }
 0x2e6   :  { %v1184_v60 = vpop.f32.mrb[32].mxu1 }
 0x2e7   :  { %v1401_v23 = vpop.f32.mrb[33].mxu1  ;;  %v1185_v26 = vadd.f32 %v1273_v22, %v1184_v60 }
 0x2e8   :  { %v1187_v24 = vpop.f32.mrb[34].mxu1 }
 0x2e9   :  { %v1402_v25 = vpop.f32.mrb[35].mxu1  ;;  %1544 = vtanh.f32 %v1185_v26 }
 0x2f3   :  { %v1545_v30 = vpop.eup %1544 }
 0x2f4   :  { %v1199_v20 = vmul.f32 %v1545_v30, %v1277_v31 }
 0x2f6   :  { %v1201_v3 = vsel %vm1200_vm5, %v1199_v20, 0.0 }
 0x35f   :  { %v1052_v27 = vpop.xlane.xlu1 %1051 }
 0x360   :  { %v1053_v28 = vsub.f32 %v1048_v21, %v1052_v27 }
 0x362   :  { %v1054_v12 = vmul.f32 1.442695, %v1053_v28 }
 0x364   :  { %1546 = vpow2.f32 %v1054_v12 }
 0x36e   :  { %v1547_v58 = vpop.eup %1546 }
 0x36f   :  { %v1056_v32 = vsel %vm1049_vm4, %v1547_v58, 0.0 }
 0x370   :  { %1057 = vadd.xlane.f32.xlu1 %v1056_v32 }
 0x374   :  { %1202 = vadd.xlane.f32.xlu1 %v1201_v3 }
 0x3fd   :  { %v1058_v55 = vpop.xlane.xlu1 %1057 }
 0x3fe   :  { %1548 = vrcp.f32 %v1058_v55 }
 0x401   :  { %v1203_v38 = vpop.xlane.xlu1 %1202 }
 0x402   :  { %v1210_v61 = vadd.f32 %v1278_v37, %v1203_v38 }
 0x404   :  { %1212 = vst.msk [vmem:[%s2199_s16] sm:$0x3] %vm1211_vm6, %v1210_v61 }
 0x408   :  { %v1549_v41 = vpop.eup %1548 }
 0x409   :  { %v1060_v57 = vmul.f32 %v1549_v41, %v1547_v58 }
 0x40b   :  { %1061 = vst [vmem:[#allocation4] sm:$0x3] %v1060_v57 }
 0x40c   :  { %1561 = shalt.err (!%p1558_p4)
}
 0x40d   :  { %s1562_s27 = scalar_lea.hbm %s2198_s15, 32 }
 0x40e   :  { %p1563_p5 = scmp.ne.s32.totalorder %s2198_s15, %s1562_s27  ;;  %p1566_p6 = scmp.lt.u32.totalorder %s1562_s27, %s2198_s15 }
 0x410   :  { %p1568_p7 = pnand %p1566_p6, %p1563_p5 }
 0x412   :  { %1571 = shalt.err (!%p1568_p7)
}
 0x413   :  { %1222 = dma.vmem_to_hbm [thread:$0]  %s1220_s13, 32, %s2198_s15, [#allocation5]  }
 0x414   :  { %1572 = dma.done.wait [#allocation5], 32  }
 0x415   :  { %1573 = vsyncadd [#allocation5], 4294967264 }
 0x416   :  { %1230 = vsyncpa [#allocation5], 1 }

</bundles_post_ra>
